<compile_context>
chip_gen: v7x
topology: tpu7x:2x2x1
jax: 0.10.0
libtpu: 0.0.40
codegen_flags: <defaults>
</compile_context>

<pallas_src>
import jax
import jax.numpy as jnp
from jax.experimental import pallas as pl
from jax.experimental.pallas import tpu as pltpu

EPS = 1e-6


def _round_up(x, m):
    return (x + m - 1) // m * m


def _make_kernel(d_real):
    """Kernel factory; d_real = un-padded hidden size (LayerNorm denominator)."""
    d_f = float(d_real)

    def kernel(x_ref, a_ref, b_ref, w_ref, wb_ref, o_ref,
               acc_ref, mean_ref, inv_ref):
        # x_ref : (tm, Dp)   row tile, resident across the K axis
        # a_ref : (1, tk)    LayerNorm scale slice     b_ref: (1, tk) shift slice
        # w_ref : (tk, Dp)   bf16 weight K-slab        wb_ref: (1, Dp) dense bias
        # acc_ref: (tm, Dp) f32 accumulator; mean/inv: (tm, 1) f32 LN stats
        k = pl.program_id(1)
        nk = pl.num_programs(1)
        tk = w_ref.shape[0]

        @pl.when(k == 0)
        def _():
            # Fused single-pass statistics (padding lanes are zero, so the sums
            # are already over the real features; use the real d as denominator).
            x = x_ref[...].astype(jnp.float32)
            s1 = jnp.sum(x, axis=-1, keepdims=True)
            s2 = jnp.sum(x * x, axis=-1, keepdims=True)
            mean = s1 * (1.0 / d_f)
            var = jnp.maximum(s2 - s1 * mean, 0.0) * (1.0 / (d_f - 1.0))  # unbiased
            std = jnp.sqrt(var)
            mean_ref[...] = mean
            inv_ref[...] = pl.reciprocal(std + EPS, approx=True)  # EUP, not VALU
            acc_ref[...] = jnp.zeros_like(acc_ref)

        # LayerNorm slice for this K step, then bf16 matmul into the f32 acc.
        koff = pl.multiple_of(k * tk, 128)
        xk = x_ref[:, pl.ds(koff, tk)].astype(jnp.float32)
        ln_k = a_ref[...] * (xk - mean_ref[...]) * inv_ref[...] + b_ref[...]
        acc_ref[...] += jnp.dot(ln_k.astype(jnp.bfloat16), w_ref[...],
                                preferred_element_type=jnp.float32)

        @pl.when(k == nk - 1)
        def _():
            # dropout (eval) = identity; residual add + dense bias in f32.
            x = x_ref[...].astype(jnp.float32)
            o_ref[...] = (x + acc_ref[...] + wb_ref[...]).astype(o_ref.dtype)

    return kernel


def sublayer_connection(x, a_2, b_2, w, w_bias, *, tm=256):
    """x: [B, S, D]. Returns x + Dense(LayerNorm(x)), same shape/dtype."""
    B, S, D = x.shape
    rows = B * S
    out_dtype = x.dtype

    # Lane-dense hidden size and 128-aligned (8-aligned minimum) row tile.
    Dp = _round_up(D, 128)
    tm_eff = min(tm, _round_up(rows, 8))
    rows_p = _round_up(rows, tm_eff)

    # K tile for the weight's input dimension: keep the weight resident only
    # while the bf16 (Dp, Dp) slab is small; otherwise tile K (v7x VMEM).
    if Dp * Dp * 2 <= (8 << 20):           # up to D = 2048 in bf16
        tk = Dp
    else:
        tk = 128
        for cand in (512, 384, 256):
            if Dp % cand == 0:
                tk = cand
                break
    num_k = Dp // tk

    # Zero padding keeps the math exact: padded LN-scale/shift/weight/bias are
    # zero, so padded lanes/rows contribute nothing and are sliced off at the end.
    x2 = jnp.pad(x.reshape(rows, D), ((0, rows_p - rows), (0, Dp - D)))
    a2 = jnp.pad(a_2.reshape(1, D).astype(jnp.float32), ((0, 0), (0, Dp - D)))
    b2 = jnp.pad(b_2.reshape(1, D).astype(jnp.float32), ((0, 0), (0, Dp - D)))
    wb = jnp.pad(w_bias.reshape(1, D).astype(jnp.float32), ((0, 0), (0, Dp - D)))
    wp = jnp.pad(w, ((0, Dp - D), (0, Dp - D))).astype(jnp.bfloat16)

    # Explicit scoped-VMEM budget (double-buffered inputs/outputs + scratch).
    in_b = jnp.dtype(x.dtype).itemsize
    out_b = jnp.dtype(out_dtype).itemsize
    need = (2 * tm_eff * Dp * in_b          # x row tiles
            + 2 * tk * Dp * 2               # bf16 weight slabs
            + 2 * tm_eff * Dp * out_b       # output tiles
            + tm_eff * Dp * 4               # f32 accumulator
            + 2 * tm_eff * 4                # mean / inv scratch
            + 4 * tk * 4 + 2 * Dp * 4)      # a_2 / b_2 / dense bias
    vmem_limit = int(min(max(need * 3 // 2, 32 << 20), 100 << 20))

    out = pl.pallas_call(
        _make_kernel(D),
        out_shape=jax.ShapeDtypeStruct((rows_p, Dp), out_dtype),
        grid_spec=pltpu.PrefetchScalarGridSpec(
            num_scalar_prefetch=0,
            grid=(rows_p // tm_eff, num_k),
            in_specs=[
                pl.BlockSpec((tm_eff, Dp), lambda i, k: (i, 0)),  # x rows
                pl.BlockSpec((1, tk), lambda i, k: (0, k)),       # a_2 slice
                pl.BlockSpec((1, tk), lambda i, k: (0, k)),       # b_2 slice
                pl.BlockSpec((tk, Dp), lambda i, k: (k, 0)),      # weight K-slab
                pl.BlockSpec((1, Dp), lambda i, k: (0, 0)),       # dense bias
            ],
            out_specs=pl.BlockSpec((tm_eff, Dp), lambda i, k: (i, 0)),
            scratch_shapes=[
                pltpu.VMEM((tm_eff, Dp), jnp.float32),   # f32 accumulator
                pltpu.VMEM((tm_eff, 1), jnp.float32),    # mean
                pltpu.VMEM((tm_eff, 1), jnp.float32),    # 1/(std+eps)
            ],
        ),
        compiler_params=pltpu.CompilerParams(
            dimension_semantics=("parallel", "arbitrary"),
            vmem_limit_bytes=vmem_limit,
        ),
    )(x2, a2, b2, wp, wb)
    return out[:rows, :D].reshape(B, S, D)


def _reference(x, a_2, b_2, w, w_bias):
    """Pure-JAX reference mirroring the kernel's bf16 matmul / f32 LN numerics."""
    xf = x.astype(jnp.float32)
    d = xf.shape[-1]
    mean = jnp.mean(xf, axis=-1, keepdims=True)
    xc = xf - mean
    std = jnp.sqrt(jnp.sum(xc * xc, axis=-1, keepdims=True) / (d - 1))  # unbiased
    ln = a_2 * xc / (std + EPS) + b_2
    s = jnp.dot(ln.reshape(-1, d).astype(jnp.bfloat16), w.astype(jnp.bfloat16),
                preferred_element_type=jnp.float32).reshape(xf.shape) + w_bias
    return (xf + s).astype(x.dtype)


if __name__ == "__main__":
    B, S, D = 2, 8, 32
    key = jax.random.PRNGKey(0)
    kx, kw, kb = jax.random.split(key, 3)

    x = jax.random.normal(kx, (B, S, D), dtype=jnp.float32)

    # LayerNorm params exactly as in the module __init__: ones / zeros
    a_2 = jnp.ones((D,), dtype=jnp.float32)
    b_2 = jnp.zeros((D,), dtype=jnp.float32)

    # Deterministic synthetic sublayer (dense D -> D)
    w = jax.random.normal(kw, (D, D), dtype=jnp.float32) * 0.05
    w_bias = jax.random.normal(kb, (D,), dtype=jnp.float32) * 0.01

    out = jax.block_until_ready(sublayer_connection(x, a_2, b_2, w, w_bias))

    ref = _reference(x, a_2, b_2, w, w_bias)
    assert out.shape == (B, S, D)
    assert bool(jnp.all(jnp.isfinite(out)))
    # bf16 MXU feed + approx reciprocal => compare at bf16-level tolerance.
    assert jnp.allclose(out, ref, atol=1e-2, rtol=1e-2), \
        float(jnp.max(jnp.abs(out - ref)))

    print("KERNEL_OK")
</pallas_src>

<mosaic_0001>
module attributes {stable_mosaic.version = 11 : i64} {
  func.func @kernel(%arg0: i32, %arg1: i32, %arg2: memref<16x128xf32, #tpu.memory_space<vmem>>, %arg3: memref<1x128xf32, #tpu.memory_space<vmem>>, %arg4: memref<1x128xf32, #tpu.memory_space<vmem>>, %arg5: memref<128x128xbf16, #tpu.memory_space<vmem>>, %arg6: memref<1x128xf32, #tpu.memory_space<vmem>>, %arg7: memref<16x128xf32, #tpu.memory_space<vmem>>, %arg8: memref<16x128xf32, #tpu.memory_space<vmem>>, %arg9: memref<16x1xf32, #tpu.memory_space<vmem>>, %arg10: memref<16x1xf32, #tpu.memory_space<vmem>>) attributes {dimension_semantics = [#tpu.dimension_semantics<parallel>, #tpu.dimension_semantics<arbitrary>], iteration_bounds = array<i64: 1, 1>, scalar_prefetch = 0 : i64, scratch_operands = 3 : i64, tpu.core_type = #tpu.core_type<tc>, window_params = [{transform_indices = @transform_0, window_bounds = array<i64: 16, 128>}, {transform_indices = @transform_1, window_bounds = array<i64: 1, 128>}, {transform_indices = @transform_2, window_bounds = array<i64: 1, 128>}, {transform_indices = @transform_3, window_bounds = array<i64: 128, 128>}, {pipeline_mode = #tpu.pipeline_mode<synchronous>, transform_indices = @transform_4, window_bounds = array<i64: 1, 128>}, {transform_indices = @transform_5, window_bounds = array<i64: 16, 128>}]} {
    %c0_i32 = arith.constant 0 : i32
    %0 = arith.cmpi eq, %arg1, %c0_i32 : i32
    %1 = arith.extui %0 : i1 to i32
    %c0_i32_0 = arith.constant 0 : i32
    %2 = arith.cmpi ne, %1, %c0_i32_0 : i32
    scf.if %2 {
      %c0_17 = arith.constant 0 : index
      %c0_18 = arith.constant 0 : index
      %28 = vector.load %arg2[%c0_17, %c0_18] : memref<16x128xf32, #tpu.memory_space<vmem>>, vector<16x128xf32>
      %cst_19 = arith.constant dense<0.000000e+00> : vector<16xf32>
      %29 = vector.multi_reduction <add>, %28, %cst_19 [1] : vector<16x128xf32> to vector<16xf32>
      %30 = vector.shape_cast %29 : vector<16xf32> to vector<16x1xf32>
      %31 = arith.mulf %28, %28 : vector<16x128xf32>
      %cst_20 = arith.constant dense<0.000000e+00> : vector<16xf32>
      %32 = vector.multi_reduction <add>, %31, %cst_20 [1] : vector<16x128xf32> to vector<16xf32>
      %33 = vector.shape_cast %32 : vector<16xf32> to vector<16x1xf32>
      %cst_21 = arith.constant 3.125000e-02 : f32
      %34 = vector.broadcast %cst_21 : f32 to vector<16x1xf32>
      %35 = arith.mulf %30, %34 : vector<16x1xf32>
      %36 = arith.mulf %30, %35 : vector<16x1xf32>
      %37 = arith.subf %33, %36 : vector<16x1xf32>
      %cst_22 = arith.constant 0.000000e+00 : f32
      %38 = vector.broadcast %cst_22 : f32 to vector<16x1xf32>
      %39 = arith.maximumf %37, %38 : vector<16x1xf32>
      %cst_23 = arith.constant 0.0322580636 : f32
      %40 = vector.broadcast %cst_23 : f32 to vector<16x1xf32>
      %41 = arith.mulf %39, %40 : vector<16x1xf32>
      %42 = math.sqrt %41 : vector<16x1xf32>
      %c0_24 = arith.constant 0 : index
      %c0_25 = arith.constant 0 : index
      %43 = vector.load %arg9[%c0_24, %c0_25] : memref<16x1xf32, #tpu.memory_space<vmem>>, vector<16x1xf32>
      tpu.vector_store %arg9[%c0_24, %c0_25], %35 {strides = array<i32>} : memref<16x1xf32, #tpu.memory_space<vmem>>, vector<16x1xf32>,
      %cst_26 = arith.constant 9.99999997E-7 : f32
      %44 = vector.broadcast %cst_26 : f32 to vector<16x1xf32>
      %45 = arith.addf %42, %44 : vector<16x1xf32>
      %46 = tpu.reciprocal %45 {approx = true} : vector<16x1xf32> -> vector<16x1xf32>
      %c0_27 = arith.constant 0 : index
      %c0_28 = arith.constant 0 : index
      %47 = vector.load %arg10[%c0_27, %c0_28] : memref<16x1xf32, #tpu.memory_space<vmem>>, vector<16x1xf32>
      tpu.vector_store %arg10[%c0_27, %c0_28], %46 {strides = array<i32>} : memref<16x1xf32, #tpu.memory_space<vmem>>, vector<16x1xf32>,
      %cst_29 = arith.constant 0.000000e+00 : f32
      %48 = vector.broadcast %cst_29 : f32 to vector<16x128xf32>
      %c0_30 = arith.constant 0 : index
      %c0_31 = arith.constant 0 : index
      %49 = vector.load %arg8[%c0_30, %c0_31] : memref<16x128xf32, #tpu.memory_space<vmem>>, vector<16x128xf32>
      tpu.vector_store %arg8[%c0_30, %c0_31], %48 {strides = array<i32>} : memref<16x128xf32, #tpu.memory_space<vmem>>, vector<16x128xf32>,
    } else {
    }
    %c128_i32 = arith.constant 128 : i32
    %3 = arith.muli %arg1, %c128_i32 : i32
    %4 = tpu.assume_multiple %3, 128 : i32
    %c0 = arith.constant 0 : index
    %5 = arith.index_cast %4 : i32 to index
    %6 = vector.load %arg2[%c0, %5] : memref<16x128xf32, #tpu.memory_space<vmem>>, vector<16x128xf32>
    %c0_1 = arith.constant 0 : index
    %c0_2 = arith.constant 0 : index
    %7 = vector.load %arg3[%c0_1, %c0_2] : memref<1x128xf32, #tpu.memory_space<vmem>>, vector<1x128xf32>
    %c0_3 = arith.constant 0 : index
    %c0_4 = arith.constant 0 : index
    %8 = vector.load %arg9[%c0_3, %c0_4] : memref<16x1xf32, #tpu.memory_space<vmem>>, vector<16x1xf32>
    %9 = vector.broadcast %8 : vector<16x1xf32> to vector<16x128xf32>
    %10 = arith.subf %6, %9 : vector<16x128xf32>
    %11 = vector.broadcast %7 : vector<1x128xf32> to vector<16x128xf32>
    %12 = arith.mulf %11, %10 : vector<16x128xf32>
    %c0_5 = arith.constant 0 : index
    %c0_6 = arith.constant 0 : index
    %13 = vector.load %arg10[%c0_5, %c0_6] : memref<16x1xf32, #tpu.memory_space<vmem>>, vector<16x1xf32>
    %14 = vector.broadcast %13 : vector<16x1xf32> to vector<16x128xf32>
    %15 = arith.mulf %12, %14 : vector<16x128xf32>
    %c0_7 = arith.constant 0 : index
    %c0_8 = arith.constant 0 : index
    %16 = vector.load %arg4[%c0_7, %c0_8] : memref<1x128xf32, #tpu.memory_space<vmem>>, vector<1x128xf32>
    %17 = vector.broadcast %16 : vector<1x128xf32> to vector<16x128xf32>
    %18 = arith.addf %15, %17 : vector<16x128xf32>
    %c0_9 = arith.constant 0 : index
    %c0_10 = arith.constant 0 : index
    %19 = vector.load %arg8[%c0_9, %c0_10] : memref<16x128xf32, #tpu.memory_space<vmem>>, vector<16x128xf32>
    %20 = arith.truncf %18 : vector<16x128xf32> to vector<16x128xbf16>
    %c0_11 = arith.constant 0 : index
    %c0_12 = arith.constant 0 : index
    %21 = vector.load %arg5[%c0_11, %c0_12] : memref<128x128xbf16, #tpu.memory_space<vmem>>, vector<128x128xbf16>
    %cst = arith.constant dense<0.000000e+00> : vector<16x128xf32>
    %22 = tpu.matmul %20, %21, %cst {dimension_numbers = #tpu.dot_dimension_numbers<[1], [0], [0], [1], [0, 0, 1, 1], [], []>} : vector<16x128xbf16>, vector<128x128xbf16>, vector<16x128xf32> -> vector<16x128xf32>
    %23 = arith.addf %19, %22 : vector<16x128xf32>
    %c0_13 = arith.constant 0 : index
    %c0_14 = arith.constant 0 : index
    %24 = vector.load %arg8[%c0_13, %c0_14] : memref<16x128xf32, #tpu.memory_space<vmem>>, vector<16x128xf32>
    tpu.vector_store %arg8[%c0_13, %c0_14], %23 {strides = array<i32>} : memref<16x128xf32, #tpu.memory_space<vmem>>, vector<16x128xf32>,
    %c0_i32_15 = arith.constant 0 : i32
    %25 = arith.cmpi eq, %arg1, %c0_i32_15 : i32
    %26 = arith.extui %25 : i1 to i32
    %c0_i32_16 = arith.constant 0 : i32
    %27 = arith.cmpi ne, %26, %c0_i32_16 : i32
    scf.if %27 {
      %c0_17 = arith.constant 0 : index
      %c0_18 = arith.constant 0 : index
      %28 = vector.load %arg2[%c0_17, %c0_18] : memref<16x128xf32, #tpu.memory_space<vmem>>, vector<16x128xf32>
      %c0_19 = arith.constant 0 : index
      %c0_20 = arith.constant 0 : index
      %29 = vector.load %arg8[%c0_19, %c0_20] : memref<16x128xf32, #tpu.memory_space<vmem>>, vector<16x128xf32>
      %30 = arith.addf %28, %29 : vector<16x128xf32>
      %c0_21 = arith.constant 0 : index
      %c0_22 = arith.constant 0 : index
      %31 = vector.load %arg6[%c0_21, %c0_22] : memref<1x128xf32, #tpu.memory_space<vmem>>, vector<1x128xf32>
      %32 = vector.broadcast %31 : vector<1x128xf32> to vector<16x128xf32>
      %33 = arith.addf %30, %32 : vector<16x128xf32>
      %c0_23 = arith.constant 0 : index
      %c0_24 = arith.constant 0 : index
      %34 = vector.load %arg7[%c0_23, %c0_24] : memref<16x128xf32, #tpu.memory_space<vmem>>, vector<16x128xf32>
      tpu.vector_store %arg7[%c0_23, %c0_24], %33 {strides = array<i32>} : memref<16x128xf32, #tpu.memory_space<vmem>>, vector<16x128xf32>,
    } else {
    }
    return
  }
  func.func @transform_0(%arg0: i32, %arg1: i32) -> (i32, i32) {
    %c0_i32 = arith.constant 0 : i32
    %c0_i32_0 = arith.constant 0 : i32
    return %arg0, %c0_i32 : i32, i32
  }
  func.func @transform_1(%arg0: i32, %arg1: i32) -> (i32, i32) {
    %c0_i32 = arith.constant 0 : i32
    %c0_i32_0 = arith.constant 0 : i32
    return %c0_i32, %arg1 : i32, i32
  }
  func.func @transform_2(%arg0: i32, %arg1: i32) -> (i32, i32) {
    %c0_i32 = arith.constant 0 : i32
    %c0_i32_0 = arith.constant 0 : i32
    return %c0_i32, %arg1 : i32, i32
  }
  func.func @transform_3(%arg0: i32, %arg1: i32) -> (i32, i32) {
    %c0_i32 = arith.constant 0 : i32
    %c0_i32_0 = arith.constant 0 : i32
    return %arg1, %c0_i32 : i32, i32
  }
  func.func @transform_4(%arg0: i32, %arg1: i32) -> (i32, i32) {
    %c0_i32 = arith.constant 0 : i32
    %c0_i32_0 = arith.constant 0 : i32
    %c0_i32_1 = arith.constant 0 : i32
    return %c0_i32, %c0_i32_0 : i32, i32
  }
  func.func @transform_5(%arg0: i32, %arg1: i32) -> (i32, i32) {
    %c0_i32 = arith.constant 0 : i32
    %c0_i32_0 = arith.constant 0 : i32
    return %arg0, %c0_i32 : i32, i32
  }
}

</mosaic_0001>

<bundles_post_ra>
// kernel: tpu_custom_call.1
= control target key start
LH: loop header
LB: loop body
LE: loop exit
PB: predicated region body
PF: predicated region fallthrough
CT: control target
= control target key end

     0   :  { %10 = vsyncpa [#allocation6], 0  ;;  %s553_s0 = inlined_call_operand.hbm [shape: f32[16,128], index: 0, kind: input, shape index: {}]   ;;  %s554_s1 = inlined_call_operand.vmem [shape: f32[1,128], index: 1, kind: input, shape index: {}]   ;;  %s555_s2 = inlined_call_operand.vmem [shape: f32[1,128], index: 2, kind: input, shape index: {}]   ;;  %s556_s3 = inlined_call_operand.hbm [shape: bf16[128,128], index: 3, kind: input, shape index: {}]   ;;  %s557_s4 = inlined_call_operand.vmem [shape: f32[1,128], index: 4, kind: input, shape index: {}]   ;;  %s558_s5 = inlined_call_operand.hbm [shape: f32[16,128], index: 5, kind: output, shape index: {}]  }
   0x1   :  { %11 = vsyncpa [#allocation9], 0 }
   0x2   :  { %12 = vsyncpa [#allocation7], 0  ;;  %s444_s18 = smov [#allocation5]   ;;  %s372_s22 = scalar_lea.hbm %s553_s0, 256 }
   0x3   :  { %s18_s19 = sshll.u32 %s444_s18, 4  ;;  %p373_p0 = scmp.ne.s32.totalorder %s553_s0, %s372_s22  ;;  %s19_s19 = int_to_ptr.vmem [resolvable:$true] %s18_s19 }
   0x4   :  { %p376_p1 = scmp.lt.u32.totalorder %s372_s22, %s553_s0 }
   0x6   :  { %p378_p2 = pnand %p376_p1, %p373_p0 }
   0x8   :  { %381 = shalt.err (!%p378_p2)
}
   0x9   :  { %s382_s27 = scalar_lea.vmem %s19_s19, 256  ;;  %p387_p4 = scmp.lt.s32.totalorder %s19_s19, %s19_s19 }
   0xa   :  { %p383_p3 = scmp.ne.s32.totalorder %s19_s19, %s382_s27  ;;  %p388_p5 = scmp.lt.s32.totalorder %s382_s27, %s382_s27 }
   0xc   :  { %p389_p6 = por %p388_p5, %p387_p4 }
   0xe   :  { %p390_p7 = pnand %p389_p6, %p383_p3 }
  0x10   :  { %393 = shalt.err (!%p390_p7)
}
  0x11   :  { %s445_s28 = smov 128   ;;  %s446_s29 = smov 8  }
  0x12   :  { %24 = dma.hbm_to_vmem [thread:$0]  %s553_s0, 256, %s19_s19, [#allocation6], %s445_s28, %s445_s28, %s446_s29  }
  0x13   :  { %s447_s7 = smov [#allocation8]   ;;  %s394_s11 = scalar_lea.hbm %s556_s3, 1024 }
  0x14   :  { %s34_s8 = sshll.u32 %s447_s7, 4  ;;  %p395_p8 = scmp.ne.s32.totalorder %s556_s3, %s394_s11  ;;  %s35_s8 = int_to_ptr.vmem [resolvable:$true] %s34_s8 }
  0x15   :  { %p398_p9 = scmp.lt.u32.totalorder %s394_s11, %s556_s3 }
  0x17   :  { %p400_p10 = pnand %p398_p9, %p395_p8 }
  0x19   :  { %403 = shalt.err (!%p400_p10)
}
  0x1a   :  { %s404_s16 = scalar_lea.vmem %s35_s8, 1024  ;;  %p409_p12 = scmp.lt.s32.totalorder %s35_s8, %s35_s8 }
  0x1b   :  { %p405_p11 = scmp.ne.s32.totalorder %s35_s8, %s404_s16  ;;  %p410_p13 = scmp.lt.s32.totalorder %s404_s16, %s404_s16 }
  0x1d   :  { %p411_p0 = por %p410_p13, %p409_p12 }
  0x1f   :  { %p412_p1 = pnand %p411_p0, %p405_p11 }
  0x21   :  { %415 = shalt.err (!%p412_p1)
}
  0x22   :  { %s448_s0 = smov 64   ;;  %s449_s17 = smov 4  }
  0x23   :  { %40 = dma.hbm_to_vmem [thread:$0]  %s556_s3, 1024, %s35_s8, [#allocation9], %s448_s0, %s448_s0, %s449_s17  }
  0x24   :  { %438 = dma.done.wait [#allocation6], 256  }
  0x25   :  { %439 = vsyncadd [#allocation6], 4294967040 }
  0x26   :  { %440 = dma.done.wait [#allocation9], 1024  }
  0x27   :  { %441 = vsyncadd [#allocation9], 4294966272  ;;  %v511_v0 = vld [vmem:[#allocation5] sm:$0xff]  ;;  %v513_v1 = vld [vmem:[#allocation5 + $0x8] sm:$0xff]  ;;  %v450_v4 = vmov 0   ;;  %vm90_vm0 = vcmask 7168  }
  0x28   :  { %56 = vadd.xlane.f32.xlu0 %v511_v0  ;;  %v60_v2 = vmul.f32 %v511_v0, %v511_v0  ;;  %v61_v3 = vmul.f32 %v513_v1, %v513_v1  ;;  %355 = vset.pattern.permute.xlu1 %v450_v4  ;;  %v356_v21 = vld [vmem:[#allocation8] sm:$0xff]   ;;  %v451_v22 = vmov 0.0   ;;  %v357_v23 = vld [vmem:[#allocation8 + $0x8] sm:$0xff]   ;;  %v358_v25 = vld [vmem:[#allocation8 + $0x10] sm:$0xff]   ;;  %vm452_vm5 = vmmov 0  }
  0x29   :  { %354 = vset.pattern.permute.xlu0 %v450_v4  ;;  %324 = vmatprep.subr.bf16.mxu0 %v451_v22  ;;  %v359_v30 = vld [vmem:[#allocation8 + $0x18] sm:$0xff]   ;;  %v360_v36 = vld [vmem:[#allocation8 + $0x20] sm:$0xff]   ;;  %v361_v39 = vld [vmem:[#allocation8 + $0x28] sm:$0xff]  }
  0x2a   :  { %62 = vadd.xlane.f32.xlu1 %v60_v2  ;;  %325 = vmatpush3.bf16.msra.mxu0 %v356_v21  ;;  %v362_v43 = vld [vmem:[#allocation8 + $0x30] sm:$0xff]   ;;  %v363_v45 = vld [vmem:[#allocation8 + $0x38] sm:$0xff]  }
  0x2b   :  { %326 = vmatprep.subr.bf16.mxu0 %v451_v22  ;;  %340 = vmatprep.mubr.msk.bf16.mxu0 %vm452_vm5, %v451_v22  ;;  %v304_v49 = vld [vmem:[%s554_s1] ss:$0 sm:$0xff]  ;;  %s453_s1 = smov [#allocation10]  }
  0x2c   :  { %58 = vadd.xlane.f32.xlu0 %v513_v1  ;;  %v305_v55 = vld [vmem:[%s555_s2] ss:$0 sm:$0xff]  ;;  %s290_s25 = sshll.u32 %s453_s1, 4  ;;  %s291_s25 = int_to_ptr.vmem [resolvable:$true] %s290_s25 }
  0x2d   :  { %v314_v62 = vld [vmem:[%s557_s4] ss:$0 sm:$0xff]  ;;  %s416_s2 = scalar_lea.vmem %s291_s25, 256  ;;  %p421_p3 = scmp.lt.s32.totalorder %s291_s25, %s291_s25 }
  0x2e   :  { %64 = vadd.xlane.f32.xlu1 %v61_v3  ;;  %327 = vmatpush3.bf16.msra.mxu0 %v357_v23  ;;  %p417_p2 = scmp.ne.s32.totalorder %s291_s25, %s416_s2  ;;  %p422_p4 = scmp.lt.s32.totalorder %s416_s2, %s416_s2 }
  0x2f   :  { %328 = vmatprep.subr.bf16.mxu0 %v451_v22 }
  0x30   :  { %p423_p5 = por %p422_p4, %p421_p3 }
  0x32   :  { %329 = vmatpush3.bf16.msra.mxu0 %v358_v25  ;;  %p424_p6 = pnand %p423_p5, %p417_p2 }
  0x33   :  { %330 = vmatprep.subr.bf16.mxu0 %v451_v22 }
  0x36   :  { %331 = vmatpush3.bf16.msra.mxu0 %v359_v30 }
  0x37   :  { %332 = vmatprep.subr.bf16.mxu0 %v451_v22 }
  0x3a   :  { %333 = vmatpush3.bf16.msra.mxu0 %v360_v36 }
  0x3b   :  { %334 = vmatprep.subr.bf16.mxu0 %v451_v22 }
  0x3e   :  { %335 = vmatpush3.bf16.msra.mxu0 %v361_v39 }
  0x3f   :  { %336 = vmatprep.subr.bf16.mxu0 %v451_v22 }
  0x42   :  { %337 = vmatpush3.bf16.msra.mxu0 %v362_v43 }
  0x43   :  { %338 = vmatprep.subr.bf16.mxu0 %v451_v22 }
  0x46   :  { %339 = vmatpush3.bf16.msra.mxu0 %v363_v45 }
  0xb5   :  { %v57_v5 = vpop.xlane.xlu0 %56 }
  0xb6   :  { %v66_v6 = vmul.f32 0.03125, %v57_v5 }
  0xb7   :  { %v63_v7 = vpop.xlane.xlu1 %62 }
  0xb8   :  { %v68_v8 = vmul.f32 %v66_v6, %v57_v5  ;;  %91 = vst.msk [vmem:[#allocation3] sm:$0xff] %vm90_vm0, %v66_v6 }
  0xb9   :  { %v59_v9 = vpop.xlane.xlu0 %58 }
  0xba   :  { %v67_v10 = vmul.f32 0.03125, %v59_v9  ;;  %v70_v11 = vsub.f32 %v63_v7, %v68_v8 }
  0xbb   :  { %v65_v12 = vpop.xlane.xlu1 %64 }
  0xbc   :  { %v69_v13 = vmul.f32 %v67_v10, %v59_v9  ;;  %92 = vst.msk [vmem:[#allocation3 + $0x8] sm:$0xff] %vm90_vm0, %v67_v10  ;;  %v72_v14 = vmax.f32 %v70_v11, 0.0 }
  0xbe   :  { %v74_v15 = vmul.f32 0.032258064, %v72_v14  ;;  %v71_v16 = vsub.f32 %v65_v12, %v69_v13 }
  0xbf   :  { %v108_v17 = vld [vmem:[#allocation3] sm:$0xff] }
  0xc0   :  { %364 = vrsqrt.f32 %v74_v15  ;;  %112 = vperm.xlu0 %354, %v108_v17   ;;  %v73_v18 = vmax.f32 %v71_v16, 0.0  ;;  %vm78_vm1 = vcmp.eq.f32.partialorder %v74_v15, inf  ;;  %v81_v27 = vand.u32 2147483648, %v74_v15 }
  0xc1   :  { %vm80_vm2 = vcmp.eq.f32.partialorder %v74_v15, 0.0 }
  0xc2   :  { %v75_v19 = vmul.f32 0.032258064, %v73_v18 }
  0xc3   :  { %v109_v20 = vld [vmem:[#allocation3 + $0x8] sm:$0xff] }
  0xc4   :  { %117 = vperm.xlu1 %355, %v109_v20   ;;  %366 = vrsqrt.f32 %v75_v19  ;;  %vm85_vm3 = vcmp.eq.f32.partialorder %v75_v19, inf  ;;  %v88_v34 = vand.u32 2147483648, %v75_v19  ;;  %vm87_vm4 = vcmp.eq.f32.partialorder %v75_v19, 0.0 }
  0xca   :  { %v365_v24 = vpop.eup %364 }
  0xcb   :  { %v77_v26 = vmul.f32 %v365_v24, %v74_v15 }
  0xcd   :  { %v79_v28 = vsel %vm78_vm1, %v74_v15, %v77_v26 }
  0xce   :  { %v82_v29 = vsel %vm80_vm2, %v81_v27, %v79_v28  ;;  %v367_v31 = vpop.eup %366 }
  0xcf   :  { %v93_v32 = vadd.f32 1e-06, %v82_v29  ;;  %v84_v33 = vmul.f32 %v367_v31, %v75_v19 }
  0xd1   :  { %368 = vrcp.f32 %v93_v32  ;;  %v86_v35 = vsel %vm85_vm3, %v75_v19, %v84_v33 }
  0xd2   :  { %v89_v37 = vsel %vm87_vm4, %v88_v34, %v86_v35 }
  0xd3   :  { %v94_v38 = vadd.f32 1e-06, %v89_v37 }
  0xd5   :  { %370 = vrcp.f32 %v94_v38 }
  0xdb   :  { %v369_v40 = vpop.eup %368 }
  0xdc   :  { %97 = vst.msk [vmem:[#allocation4] sm:$0xff] %vm90_vm0, %v369_v40 }
  0xdf   :  { %v371_v41 = vpop.eup %370 }
  0xe0   :  { %98 = vst.msk [vmem:[#allocation4 + $0x8] sm:$0xff] %vm90_vm0, %v371_v41 }
  0xe3   :  { %v130_v42 = vld [vmem:[#allocation4] sm:$0xff] }
  0xe4   :  { %134 = vperm.xlu1 %355, %v130_v42  }
  0xe7   :  { %v131_v44 = vld [vmem:[#allocation4 + $0x8] sm:$0xff] }
  0xe8   :  { %139 = vperm.xlu1 %355, %v131_v44  }
 0x13f   :  { %v113_v46 = vpop.permute.xlu0 %112 }
 0x140   :  { %v120_v48 = vsub.f32 %v511_v0, %v113_v46 }
 0x142   :  { %v128_v52 = vmul.f32 %v304_v49, %v120_v48 }
 0x143   :  { %v118_v47 = vpop.permute.xlu1 %117 }
 0x144   :  { %v121_v50 = vsub.f32 %v513_v1, %v118_v47 }
 0x146   :  { %v129_v54 = vmul.f32 %v304_v49, %v121_v50 }
 0x163   :  { %v135_v51 = vpop.permute.xlu1 %134 }
 0x164   :  { %v142_v53 = vmul.f32 %v135_v51, %v128_v52 }
 0x166   :  { %v151_v58 = vadd.f32 %v305_v55, %v142_v53 }
 0x167   :  { %v140_v56 = vpop.permute.xlu1 %139 }
 0x168   :  { %v143_v57 = vmul.f32 %v140_v56, %v129_v54 }
 0x16a   :  { %v152_v59 = vadd.f32 %v305_v55, %v143_v57 }
 0x16c   :  { %v155_v60 = vpack.c.bf16 %v152_v59, %v151_v58 }
 0x16e   :  { %341 = vmatmul.mubr.bf16.vlgmr.msra.gmra.mrb[0].mxu0 %v155_v60 }
 0x241   :  { %v254_v61 = vpop.f32.mrb[0].mxu0 }
 0x242   :  { %v272_v63 = vadd.f32 %v254_v61, %v511_v0  ;;  %v342_v2 = vpop.f32.mrb[1].mxu0 }
 0x243   :  { %v257_v3 = vpop.f32.mrb[2].mxu0 }
 0x244   :  { %v281_v4 = vadd.f32 %v314_v62, %v272_v63  ;;  %v273_v5 = vadd.f32 %v257_v3, %v513_v1  ;;  %v343_v6 = vpop.f32.mrb[3].mxu0 }
 0x246   :  { %283 = vst [vmem:[#allocation10] sm:$0xff] %v281_v4  ;;  %v282_v7 = vadd.f32 %v314_v62, %v273_v5 }
 0x248   :  { %284 = vst [vmem:[#allocation10 + $0x8] sm:$0xff] %v282_v7 }
 0x249   :  { %427 = shalt.err (!%p424_p6)
}
 0x24a   :  { %s428_s27 = scalar_lea.hbm %s558_s5, 256 }
 0x24b   :  { %p429_p7 = scmp.ne.s32.totalorder %s558_s5, %s428_s27  ;;  %p432_p8 = scmp.lt.u32.totalorder %s428_s27, %s558_s5 }
 0x24d   :  { %p434_p9 = pnand %p432_p8, %p429_p7 }
 0x24f   :  { %437 = shalt.err (!%p434_p9)
}
 0x250   :  { %296 = dma.vmem_to_hbm [thread:$0]  %s291_s25, 256, %s558_s5, [#allocation7], %s445_s28, %s445_s28, %s446_s29  }
 0x251   :  { %442 = dma.done.wait [#allocation7], 256  }
 0x252   :  { %443 = vsyncadd [#allocation7], 4294967040 }
 0x253   :  { %300 = vsyncpa [#allocation6], 1 }
 0x254   :  { %301 = vsyncpa [#allocation9], 1 }
 0x255   :  { %302 = vsyncpa [#allocation7], 1 }

</bundles_post_ra>
